<compile_context>
chip_gen: v7x
topology: tpu7x:2x2x1
jax: 0.10.0
libtpu: 0.0.40
codegen_flags: <defaults>
</compile_context>

<pallas_src>
import math

import jax
import jax.numpy as jnp
from jax.experimental import pallas as pl
from jax.experimental.pallas import tpu as pltpu

_LANE = 128
_SUBLANE = 8
# 2048 rows * 128 lanes * 4 B = 1 MiB per input block; 2 inputs * 2 buffers
# = 4 MiB double-buffered — comfortably under the scoped-VMEM defaults of
# v5e (16 MiB), v6e (32 MiB) and v7x (32 MiB of 64 MiB physical).
_MAX_ROWS_TILE = 2048


# ----------------------------------------------------------------------------
# Pallas kernel: per-batch sum of squared residuals (lane/sublane-dense partials)
# ----------------------------------------------------------------------------

def _loglik_kernel(x_ref, c_ref, out_ref):
    """x_ref/c_ref: (1, rows_tile, 128) feature tiles.
    out_ref: (1, 8, 128) sublane+lane-dense partial sums, accumulated over the
    feature-tile (reduction) grid axis."""
    k = pl.program_id(1)

    @pl.when(k == 0)
    def _():
        out_ref[...] = jnp.zeros_like(out_ref)

    r = x_ref[...].astype(jnp.float32) - c_ref[...].astype(jnp.float32)
    rsq = r * r
    rows_tile = rsq.shape[1]
    # Group rows into (rows_tile//8, 8) vreg-aligned tiles and reduce over the
    # group axis (plain VPU adds, no cross-lane XLU work, dense stores).
    partial = jnp.sum(rsq.reshape(1, rows_tile // _SUBLANE, _SUBLANE, _LANE),
                      axis=1)
    out_ref[...] += partial


# ----------------------------------------------------------------------------
# Wrappers
# ----------------------------------------------------------------------------

def _pad_and_reshape(x2d, rows_padded):
    b, d = x2d.shape
    d_padded = rows_padded * _LANE
    if d_padded != d:
        # Zero padding on both X and C -> residual of padded region is 0.
        x2d = jnp.pad(x2d, ((0, 0), (0, d_padded - d)))
    return x2d.reshape(b, rows_padded, _LANE)


@jax.jit
def adaptive_measurement_log_likelihood(x_nchw, c_nchw, sigma_eff):
    """log p(C | X) = -||A(X) - C||^2 / (2 sigma_eff^2), per batch element."""
    b = x_nchw.shape[0]
    d = math.prod(x_nchw.shape[1:])

    rows = -(-d // _LANE)                                        # ceil(d / 128)
    rows_tile = min(_MAX_ROWS_TILE,
                    -(-rows // _SUBLANE) * _SUBLANE)             # mult. of 8
    rows_padded = -(-rows // rows_tile) * rows_tile              # mult. of tile
    num_row_tiles = rows_padded // rows_tile

    x3d = _pad_and_reshape(x_nchw.reshape(b, -1), rows_padded)
    c3d = _pad_and_reshape(c_nchw.reshape(b, -1), rows_padded)

    lane_sums = pl.pallas_call(
        _loglik_kernel,
        out_shape=jax.ShapeDtypeStruct((b, _SUBLANE, _LANE), jnp.float32),
        grid_spec=pltpu.PrefetchScalarGridSpec(
            num_scalar_prefetch=0,
            grid=(b, num_row_tiles),                 # reduction axis last
            in_specs=[
                pl.BlockSpec((1, rows_tile, _LANE), lambda i, k: (i, k, 0)),
                pl.BlockSpec((1, rows_tile, _LANE), lambda i, k: (i, k, 0)),
            ],
            out_specs=pl.BlockSpec((1, _SUBLANE, _LANE), lambda i, k: (i, 0, 0)),
        ),
        compiler_params=pltpu.CompilerParams(
            dimension_semantics=("parallel", "arbitrary")),
    )(x3d, c3d)

    # Tiny (B, 8, 128) collapse + scalar scale in plain JAX (negligible cost,
    # removes the in-kernel SMEM prefetch and epilogue branch).
    sigma = jnp.asarray(sigma_eff, jnp.float32)
    sq_norm = jnp.sum(lane_sums, axis=(1, 2))
    return -0.5 * sq_norm / (sigma * sigma)


def adaptive_measurement_forward(x_nchw):
    """A(X) = X. Identity measurement operator: no Pallas kernel, no HBM
    round trip — returning the input unchanged is semantically identical."""
    return x_nchw


# ----------------------------------------------------------------------------
# DiffusionAwareNoiseScheduler + AdaptiveMeasurement (plain-JAX glue)
# ----------------------------------------------------------------------------

class DiffusionAwareNoiseScheduler:
    """Holds learned sigma_meas and Lipschitz constant L; combines measurement
    noise with diffusion noise: sigma_eff(t) = sqrt(sigma_meas^2 + (L*sigma_t)^2)."""

    def __init__(self, sigma_init: float, L_init: float):
        self.sigma_meas = jnp.asarray(sigma_init, jnp.float32)
        self.lipschitz_constant = jnp.asarray(L_init, jnp.float32)

    def get_effective_sigma(self, t: float, noise_schedule):
        sigma_t = jnp.asarray(noise_schedule(t), jnp.float32)
        return jnp.sqrt(self.sigma_meas ** 2 +
                        (self.lipschitz_constant * sigma_t) ** 2)


class AdaptiveMeasurement:
    def __init__(self, name: str, config: dict, device: str = "tpu"):
        self.name = name
        self.config = config
        self.device = device
        sigma_init = float(config.get("noise_level", 1.0))
        L_init = float(config.get("lipschitz_constant", 1.0))
        self.noise_scheduler = DiffusionAwareNoiseScheduler(sigma_init, L_init)
        self.current_sigma = jnp.asarray(sigma_init, jnp.float32)
        self.data = {}
        self.auto_lipschitz = config.get("auto_lipschitz", True)
        self.lipschitz_estimated = False

    def update_effective_noise(self, t: float, noise_schedule):
        self.current_sigma = self.noise_scheduler.get_effective_sigma(
            t, noise_schedule)

    def get_learned_sigma_meas(self) -> float:
        return float(self.noise_scheduler.sigma_meas)

    def estimate_lipschitz_constant(self, X_sample, C_sample) -> float:
        # TODO(synk): abstract in the PyTorch base class; identity operator => L = 1.
        return 1.0

    def forward(self, X, C):
        return adaptive_measurement_forward(X)

    def __call__(self, X, C):
        return self.forward(X, C)

    def log_likelihood(self, X, C):
        return adaptive_measurement_log_likelihood(X, C, self.current_sigma)


# ----------------------------------------------------------------------------
# Demo / smoke test
# ----------------------------------------------------------------------------

if __name__ == "__main__":
    key = jax.random.PRNGKey(0)
    kx, kc = jax.random.split(key)
    B, C, H, W = 2, 4, 16, 16          # small NCHW shapes
    X = jax.random.normal(kx, (B, C, H, W), jnp.float32)
    Cm = jax.random.normal(kc, (B, C, H, W), jnp.float32)

    meas = AdaptiveMeasurement(
        "adaptive",
        {"noise_level": 0.5, "lipschitz_constant": 1.0},
        device="tpu",
    )
    # Diffusion-aware effective noise at t=0.3 with a linear sigma schedule.
    meas.update_effective_noise(0.3, lambda t: t)

    y = meas(X, Cm)                       # identity measurement (no HBM traffic)
    ll = meas.log_likelihood(X, Cm)       # Pallas Gaussian log-likelihood
    jax.block_until_ready((y, ll))

    # Cross-check against a pure-JAX reference.
    sigma = meas.current_sigma
    ll_ref = -0.5 * jnp.sum((X - Cm).reshape(B, -1) ** 2, axis=1) / (sigma ** 2)
    assert jnp.allclose(y, X)
    assert jnp.allclose(ll, ll_ref, rtol=1e-5, atol=1e-5)

    # Also exercise a non-multiple-of-128 feature count (padding path).
    Xo = jax.random.normal(kx, (2, 3, 17, 17), jnp.float32)
    Co = jax.random.normal(kc, (2, 3, 17, 17), jnp.float32)
    ll_odd = adaptive_measurement_log_likelihood(Xo, Co, sigma)
    ll_odd_ref = -0.5 * jnp.sum((Xo - Co).reshape(2, -1) ** 2, axis=1) / (sigma ** 2)
    assert jnp.allclose(ll_odd, ll_odd_ref, rtol=1e-5, atol=1e-5)

    print("KERNEL_OK")
</pallas_src>

<mosaic_0001>
module attributes {stable_mosaic.version = 11 : i64} {
  func.func @_loglik_kernel(%arg0: i32, %arg1: i32, %arg2: memref<1x8x128xf32, #tpu.memory_space<vmem>>, %arg3: memref<1x8x128xf32, #tpu.memory_space<vmem>>, %arg4: memref<1x8x128xf32, #tpu.memory_space<vmem>>) attributes {dimension_semantics = [#tpu.dimension_semantics<parallel>, #tpu.dimension_semantics<arbitrary>], iteration_bounds = array<i64: 2, 1>, scalar_prefetch = 0 : i64, scratch_operands = 0 : i64, tpu.core_type = #tpu.core_type<tc>, window_params = [{transform_indices = @transform_0, window_bounds = array<i64: 1, 8, 128>}, {transform_indices = @transform_1, window_bounds = array<i64: 1, 8, 128>}, {transform_indices = @transform_2, window_bounds = array<i64: 1, 8, 128>}]} {
    %c0_i32 = arith.constant 0 : i32
    %0 = arith.cmpi eq, %arg1, %c0_i32 : i32
    %1 = arith.extui %0 : i1 to i32
    %c0_i32_0 = arith.constant 0 : i32
    %2 = arith.cmpi ne, %1, %c0_i32_0 : i32
    scf.if %2 {
      %cst_12 = arith.constant 0.000000e+00 : f32
      %12 = vector.broadcast %cst_12 : f32 to vector<1x8x128xf32>
      %c0_13 = arith.constant 0 : index
      %c0_14 = arith.constant 0 : index
      %c0_15 = arith.constant 0 : index
      %13 = vector.load %arg4[%c0_13, %c0_14, %c0_15] : memref<1x8x128xf32, #tpu.memory_space<vmem>>, vector<1x8x128xf32>
      tpu.vector_store %arg4[%c0_13, %c0_14, %c0_15], %12 {strides = array<i32>} : memref<1x8x128xf32, #tpu.memory_space<vmem>>, vector<1x8x128xf32>,
    } else {
    }
    %c0 = arith.constant 0 : index
    %c0_1 = arith.constant 0 : index
    %c0_2 = arith.constant 0 : index
    %3 = vector.load %arg2[%c0, %c0_1, %c0_2] : memref<1x8x128xf32, #tpu.memory_space<vmem>>, vector<1x8x128xf32>
    %c0_3 = arith.constant 0 : index
    %c0_4 = arith.constant 0 : index
    %c0_5 = arith.constant 0 : index
    %4 = vector.load %arg3[%c0_3, %c0_4, %c0_5] : memref<1x8x128xf32, #tpu.memory_space<vmem>>, vector<1x8x128xf32>
    %5 = arith.subf %3, %4 : vector<1x8x128xf32>
    %6 = arith.mulf %5, %5 : vector<1x8x128xf32>
    %7 = vector.shape_cast %6 : vector<1x8x128xf32> to vector<1x1x8x128xf32>
    %cst = arith.constant dense<0.000000e+00> : vector<1x8x128xf32>
    %8 = vector.multi_reduction <add>, %7, %cst [1] : vector<1x1x8x128xf32> to vector<1x8x128xf32>
    %c0_6 = arith.constant 0 : index
    %c0_7 = arith.constant 0 : index
    %c0_8 = arith.constant 0 : index
    %9 = vector.load %arg4[%c0_6, %c0_7, %c0_8] : memref<1x8x128xf32, #tpu.memory_space<vmem>>, vector<1x8x128xf32>
    %10 = arith.addf %9, %8 : vector<1x8x128xf32>
    %c0_9 = arith.constant 0 : index
    %c0_10 = arith.constant 0 : index
    %c0_11 = arith.constant 0 : index
    %11 = vector.load %arg4[%c0_9, %c0_10, %c0_11] : memref<1x8x128xf32, #tpu.memory_space<vmem>>, vector<1x8x128xf32>
    tpu.vector_store %arg4[%c0_9, %c0_10, %c0_11], %10 {strides = array<i32>} : memref<1x8x128xf32, #tpu.memory_space<vmem>>, vector<1x8x128xf32>,
    return
  }
  func.func @transform_0(%arg0: i32, %arg1: i32) -> (i32, i32, i32) {
    %c0_i32 = arith.constant 0 : i32
    %c0_i32_0 = arith.constant 0 : i32
    return %arg0, %arg1, %c0_i32 : i32, i32, i32
  }
  func.func @transform_1(%arg0: i32, %arg1: i32) -> (i32, i32, i32) {
    %c0_i32 = arith.constant 0 : i32
    %c0_i32_0 = arith.constant 0 : i32
    return %arg0, %arg1, %c0_i32 : i32, i32, i32
  }
  func.func @transform_2(%arg0: i32, %arg1: i32) -> (i32, i32, i32) {
    %c0_i32 = arith.constant 0 : i32
    %c0_i32_0 = arith.constant 0 : i32
    %c0_i32_1 = arith.constant 0 : i32
    return %arg0, %c0_i32, %c0_i32_0 : i32, i32, i32
  }
}

</mosaic_0001>

<bundles_post_ra>
// kernel: adaptive_measurement_log_likelihood.1
= control target key start
LH: loop header
LB: loop body
LE: loop exit
PB: predicated region body
PF: predicated region fallthrough
CT: control target
= control target key end

     0   :  { %s356_s9 = smov 0   ;;  %s358_s10 = smov 0   ;;  %s380_s0 = inlined_call_operand.vmem [shape: f32[2,8,128], index: 0, kind: input, shape index: {}]   ;;  %s381_s1 = inlined_call_operand.vmem [shape: f32[2,8,128], index: 1, kind: input, shape index: {}]   ;;  %s382_s2 = inlined_call_operand.vmem [shape: f32[2,8,128], index: 2, kind: output, shape index: {}]  }
   0x1   :  { %s360_s11 = smov 0  }
   0x2 LB: > { %s24_s12 = sadd.s32 1, %s335_s10  ;;  %p286_p0 = scmp.ge.s32.totalorder %s339_s11, 1  ;;  %s339_s11 = sphi %s360_s11, %s12_s11   ;;  %s335_s10 = sphi %s358_s10, %s384_s10   ;;  %s331_s9 = sphi %s356_s9, %s383_s9  }
   0x3   : > { %p26_p1 = scmp.ge.s32.totalorder %s24_s12, 2  ;;  %p142_p2 = scmp.lt.s32.totalorder %s339_s11, 3 }
   0x5   : > { %s386_s12 = smov (%p26_p1, %s24_s12), 0  ;;  %p143_p3 = pnand %p286_p0, %p142_p2 }
   0x6   : > { %p172_p4 = scmp.lt.s32.totalorder (!%p143_p3), %s331_s9, 1 }
   0x7   : > { %146 = sbr.rel (%p143_p3) target bundleno = 24 (0x18), region = 28 }
   0xe   : > { %s388_s9 = smov (!%p172_p4, %s331_s9), 1 }
   0xf   : > { %s287_s13 = sshll.u32 %s388_s9, 3 }
  0x10   : > { %s178_s16 = scalar_lea.vmem %s380_s0, %s287_s13  ;;  %s185_s19 = scalar_lea.vmem %s381_s1, %s287_s13 }
  0x11   : > { %v195_v0 = vld [vmem:[%s178_s16] sm:$0xff]  ;;  %s189_s22 = scalar_lea.vmem %s382_s2, %s287_s13 }
  0x12   : > { %v196_v1 = vld [vmem:[%s185_s19] sm:$0xff] }
  0x13   : > { %v197_v2 = vsub.f32 %v195_v0, %v196_v1 }
  0x15   : > { %v198_v3 = vmul.f32 %v197_v2, %v197_v2 }
  0x17   : > { %202 = vst [vmem:[%s189_s22] sm:$0xff] %v198_v3 }
  0x18 PF: > { %s12_s11 = sadd.s32 1, %s339_s11   ;;  %s383_s9 = smov %s335_s10 }
  0x19   : > { %p9_p5 = scmp.ge.s32.totalorder %s12_s11, 4   ;;  %s384_s10 = smov %s386_s12 }
  0x1b   :  { %11 = sbr.rel (!%p9_p5) target bundleno = 2 (0x2), region = 65 }

</bundles_post_ra>
